<compile_context>
chip_gen: v7x
topology: tpu7x:2x2x1
jax: 0.10.0
libtpu: 0.0.40
codegen_flags: <defaults>
</compile_context>

<pallas_src>
from functools import partial

import jax
import jax.numpy as jnp
from jax.experimental import pallas as pl
from jax.experimental.pallas import tpu as pltpu


def _round_up(n, m):
    return ((n + m - 1) // m) * m


# --------------------------------------------------------------------------- #
# Kernel
# --------------------------------------------------------------------------- #
def _qfunction_kernel(obs_ref, act_ref, w1o_ref, w1a_ref, b1_ref,
                      w2_ref, b2_ref, w3_ref, b3_ref, o_ref):
    cdt = w2_ref.dtype  # compute dtype of the matmul operands (bf16 or f32)

    # Layer 1: split matmul replaces the concatenated input (no HBM concat).
    h1 = (jnp.dot(obs_ref[...], w1o_ref[...], preferred_element_type=jnp.float32)
          + jnp.dot(act_ref[...], w1a_ref[...], preferred_element_type=jnp.float32)
          + b1_ref[...])
    h1 = jnp.maximum(h1, 0.0)                      # f32 elementwise (v5e-safe)

    # Layer 2
    h2 = jnp.dot(h1.astype(cdt), w2_ref[...],
                 preferred_element_type=jnp.float32) + b2_ref[...]
    h2 = jnp.maximum(h2, 0.0)

    # Layer 3 -> scalar q
    q = jnp.dot(h2.astype(cdt), w3_ref[...],
                preferred_element_type=jnp.float32) + b3_ref[...]
    o_ref[...] = q.astype(o_ref.dtype)


# --------------------------------------------------------------------------- #
# Parameter preparation (done ONCE, outside the forward path)
# --------------------------------------------------------------------------- #
def prepare_params(params, obs_dim, action_dim, compute_dtype=jnp.bfloat16):
    """Split/transpose/pad/cast the PyTorch-layout params for the kernel.

    params: W1 [h, obs+act], b1 [h], W2 [h, h], b2 [h], W3 [1, h], b3 [1]
    Returns kernel-ready arrays:
      W1_obs [obs_dim, hp], W1_act [act_dim, hp], W2 [hp, hp], W3 [hp, 1]
      (compute_dtype), biases b1/b2 [1, hp], b3 [1, 1] (float32).
    Zero padding of the hidden dim is numerically identical (ReLU(0)=0 and the
    padded weight rows are zero).
    """
    W1 = jnp.asarray(params["W1"], jnp.float32)
    W2 = jnp.asarray(params["W2"], jnp.float32)
    W3 = jnp.asarray(params["W3"], jnp.float32)
    b1 = jnp.asarray(params["b1"], jnp.float32)
    b2 = jnp.asarray(params["b2"], jnp.float32)
    b3 = jnp.asarray(params["b3"], jnp.float32)

    h = W1.shape[0]
    hp = _round_up(h, 128)

    w1o = jnp.zeros((obs_dim, hp), jnp.float32).at[:, :h].set(W1[:, :obs_dim].T)
    w1a = jnp.zeros((action_dim, hp), jnp.float32).at[:, :h].set(W1[:, obs_dim:].T)
    w2p = jnp.zeros((hp, hp), jnp.float32).at[:h, :h].set(W2.T)
    w3p = jnp.zeros((hp, 1), jnp.float32).at[:h, :].set(W3.T)
    b1p = jnp.zeros((1, hp), jnp.float32).at[:, :h].set(b1)
    b2p = jnp.zeros((1, hp), jnp.float32).at[:, :h].set(b2)
    b3p = b3.reshape(1, 1)

    return {
        "W1_obs": w1o.astype(compute_dtype),
        "W1_act": w1a.astype(compute_dtype),
        "W2": w2p.astype(compute_dtype),
        "W3": w3p.astype(compute_dtype),
        "b1": b1p,
        "b2": b2p,
        "b3": b3p,
    }


# --------------------------------------------------------------------------- #
# Forward pass
# --------------------------------------------------------------------------- #
@partial(jax.jit, static_argnames=("tile_b",))
def _qfunction_forward_impl(obs, action, w1o, w1a, b1, w2, b2, w3, b3, *,
                            tile_b):
    B, obs_dim = obs.shape
    act_dim = action.shape[1]
    hp = w2.shape[0]
    cdt = w2.dtype
    csize = w2.dtype.itemsize

    # Batch tiling (sweepable); tile must be a multiple of 8.
    tile = min(tile_b, _round_up(B, 8))
    b_pad = _round_up(B, tile)
    grid = (b_pad // tile,)

    obs_x = obs.astype(cdt)
    act_x = action.astype(cdt)
    if b_pad != B:
        obs_x = jnp.pad(obs_x, ((0, b_pad - B), (0, 0)))
        act_x = jnp.pad(act_x, ((0, b_pad - B), (0, 0)))

    # VMEM footprint estimate (lane dims padded to 128 by the VMEM layout).
    lane = lambda d: _round_up(d, 128)
    vmem_bytes = (
        2 * tile * (lane(obs_dim) + lane(act_dim)) * csize   # double-buffered x
        + 2 * (lane(obs_dim) + lane(act_dim) + hp) * hp * csize  # resident weights
        + 4 * hp * 4                                          # biases
        + 2 * tile * hp * 4                                   # h1/h2 f32 intermediates
        + 2 * tile * 128 * 4                                  # output tile (lane padded)
    )
    vmem_limit = int(min(max(2 * vmem_bytes, 16 * 1024 * 1024), 48 * 1024 * 1024))

    flops = 2 * b_pad * (obs_dim * hp + act_dim * hp + hp * hp + hp)
    bytes_accessed = (
        b_pad * (obs_dim + act_dim) * csize                   # x streams
        + ((obs_dim + act_dim + hp) * hp + hp) * csize        # weights
        + (2 * hp + 1) * 4                                    # biases
        + b_pad * 4                                           # output
    )

    x_spec = lambda d: pl.BlockSpec((tile, d), lambda i: (i, 0))
    const_spec = lambda shp: pl.BlockSpec(shp, lambda i: (0, 0))  # VMEM-resident

    out = pl.pallas_call(
        _qfunction_kernel,
        out_shape=jax.ShapeDtypeStruct((b_pad, 1), jnp.float32),
        grid=grid,
        in_specs=[
            x_spec(obs_dim),                 # obs   [tile, obs_dim]
            x_spec(act_dim),                 # act   [tile, act_dim]
            const_spec((obs_dim, hp)),       # W1_obs
            const_spec((act_dim, hp)),       # W1_act
            const_spec((1, hp)),             # b1
            const_spec((hp, hp)),            # W2
            const_spec((1, hp)),             # b2
            const_spec((hp, 1)),             # W3
            const_spec((1, 1)),              # b3
        ],
        out_specs=pl.BlockSpec((tile, 1), lambda i: (i, 0)),
        compiler_params=pltpu.CompilerParams(
            dimension_semantics=("parallel",),
            vmem_limit_bytes=vmem_limit,
        ),
        cost_estimate=pl.CostEstimate(
            flops=flops, transcendentals=0, bytes_accessed=bytes_accessed),
    )(obs_x, act_x, w1o, w1a, b1, w2, b2, w3, b3)

    return out[:B]


def qfunction_forward(obs, action, prepared, *, tile_b=1024):
    """Pallas-backed QFunction forward.

    obs:      [B, obs_dim]     float
    action:   [B, action_dim]  float
    prepared: output of prepare_params()
    returns:  [B, 1] float32
    """
    assert obs.shape[0] == action.shape[0]
    return _qfunction_forward_impl(
        obs, action,
        prepared["W1_obs"], prepared["W1_act"], prepared["b1"],
        prepared["W2"], prepared["b2"], prepared["W3"], prepared["b3"],
        tile_b=tile_b)


# --------------------------------------------------------------------------- #
# Synthetic init + pure-JAX reference
# --------------------------------------------------------------------------- #
def init_params(key, obs_dim, action_dim, hidden_dim):
    """Deterministic synthetic init (PyTorch-like uniform fan-in scaling)."""
    ks = jax.random.split(key, 6)
    in1 = obs_dim + action_dim

    def u(k, shape, fan_in):
        bound = 1.0 / jnp.sqrt(fan_in)
        return jax.random.uniform(k, shape, jnp.float32, -bound, bound)

    return {
        "W1": u(ks[0], (hidden_dim, in1), in1),
        "b1": u(ks[1], (hidden_dim,), in1),
        "W2": u(ks[2], (hidden_dim, hidden_dim), hidden_dim),
        "b2": u(ks[3], (hidden_dim,), hidden_dim),
        "W3": u(ks[4], (1, hidden_dim), hidden_dim),
        "b3": u(ks[5], (1,), hidden_dim),
    }


def _reference_forward(obs, action, params):
    x = jnp.concatenate([obs, action], axis=1)
    h1 = jnp.maximum(x @ params["W1"].T + params["b1"], 0.0)
    h2 = jnp.maximum(h1 @ params["W2"].T + params["b2"], 0.0)
    return h2 @ params["W3"].T + params["b3"]


if __name__ == "__main__":
    key = jax.random.PRNGKey(0)
    k_obs, k_act, k_param = jax.random.split(key, 3)

    batch = 2
    obs_dim = 16
    action_dim = 4
    hidden_dim = 32

    obs = jax.random.normal(k_obs, (batch, obs_dim), jnp.float32)
    action = jax.random.normal(k_act, (batch, action_dim), jnp.float32)
    params = init_params(k_param, obs_dim, action_dim, hidden_dim)
    q_ref = _reference_forward(obs, action, params)

    # f32 operand path: tight check against the reference.
    prep_f32 = prepare_params(params, obs_dim, action_dim,
                              compute_dtype=jnp.float32)
    q32 = jax.block_until_ready(qfunction_forward(obs, action, prep_f32))
    assert q32.shape == (batch, 1), q32.shape
    assert jnp.allclose(q32, q_ref, atol=1e-5, rtol=1e-5), (q32, q_ref)

    # bf16 operand / f32 accumulation path (production config): looser check.
    prep_bf16 = prepare_params(params, obs_dim, action_dim,
                               compute_dtype=jnp.bfloat16)
    q16 = jax.block_until_ready(qfunction_forward(obs, action, prep_bf16))
    assert q16.shape == (batch, 1), q16.shape
    assert jnp.allclose(q16, q_ref, atol=5e-2, rtol=5e-2), (q16, q_ref)

    print("KERNEL_OK")
</pallas_src>

<mosaic_0001>
module attributes {stable_mosaic.version = 11 : i64} {
  func.func @_qfunction_kernel(%arg0: i32, %arg1: memref<8x16xf32, #tpu.memory_space<vmem>>, %arg2: memref<8x4xf32, #tpu.memory_space<vmem>>, %arg3: memref<16x128xf32, #tpu.memory_space<vmem>>, %arg4: memref<4x128xf32, #tpu.memory_space<vmem>>, %arg5: memref<1x128xf32, #tpu.memory_space<vmem>>, %arg6: memref<128x128xf32, #tpu.memory_space<vmem>>, %arg7: memref<1x128xf32, #tpu.memory_space<vmem>>, %arg8: memref<128x1xf32, #tpu.memory_space<vmem>>, %arg9: memref<1x1xf32, #tpu.memory_space<vmem>>, %arg10: memref<8x1xf32, #tpu.memory_space<vmem>>) attributes {dimension_semantics = [#tpu.dimension_semantics<parallel>], iteration_bounds = array<i64: 1>, scalar_prefetch = 0 : i64, scratch_operands = 0 : i64, tpu.core_type = #tpu.core_type<tc>, window_params = [{transform_indices = @transform_0, window_bounds = array<i64: 8, 16>}, {transform_indices = @transform_1, window_bounds = array<i64: 8, 4>}, {pipeline_mode = #tpu.pipeline_mode<synchronous>, transform_indices = @transform_2, window_bounds = array<i64: 16, 128>}, {pipeline_mode = #tpu.pipeline_mode<synchronous>, transform_indices = @transform_3, window_bounds = array<i64: 4, 128>}, {pipeline_mode = #tpu.pipeline_mode<synchronous>, transform_indices = @transform_4, window_bounds = array<i64: 1, 128>}, {pipeline_mode = #tpu.pipeline_mode<synchronous>, transform_indices = @transform_5, window_bounds = array<i64: 128, 128>}, {pipeline_mode = #tpu.pipeline_mode<synchronous>, transform_indices = @transform_6, window_bounds = array<i64: 1, 128>}, {pipeline_mode = #tpu.pipeline_mode<synchronous>, transform_indices = @transform_7, window_bounds = array<i64: 128, 1>}, {pipeline_mode = #tpu.pipeline_mode<synchronous>, transform_indices = @transform_8, window_bounds = array<i64: 1, 1>}, {transform_indices = @transform_9, window_bounds = array<i64: 8, 1>}]} {
    %c0 = arith.constant 0 : index
    %c0_0 = arith.constant 0 : index
    %0 = vector.load %arg1[%c0, %c0_0] : memref<8x16xf32, #tpu.memory_space<vmem>>, vector<8x16xf32>
    %c0_1 = arith.constant 0 : index
    %c0_2 = arith.constant 0 : index
    %1 = vector.load %arg3[%c0_1, %c0_2] : memref<16x128xf32, #tpu.memory_space<vmem>>, vector<16x128xf32>
    %cst = arith.constant dense<0.000000e+00> : vector<8x128xf32>
    %2 = tpu.matmul %0, %1, %cst {dimension_numbers = #tpu.dot_dimension_numbers<[1], [0], [0], [1], [0, 0, 1, 1], [], []>} : vector<8x16xf32>, vector<16x128xf32>, vector<8x128xf32> -> vector<8x128xf32>
    %c0_3 = arith.constant 0 : index
    %c0_4 = arith.constant 0 : index
    %3 = vector.load %arg2[%c0_3, %c0_4] : memref<8x4xf32, #tpu.memory_space<vmem>>, vector<8x4xf32>
    %c0_5 = arith.constant 0 : index
    %c0_6 = arith.constant 0 : index
    %4 = vector.load %arg4[%c0_5, %c0_6] : memref<4x128xf32, #tpu.memory_space<vmem>>, vector<4x128xf32>
    %cst_7 = arith.constant dense<0.000000e+00> : vector<8x128xf32>
    %5 = tpu.matmul %3, %4, %cst_7 {dimension_numbers = #tpu.dot_dimension_numbers<[1], [0], [0], [1], [0, 0, 1, 1], [], []>} : vector<8x4xf32>, vector<4x128xf32>, vector<8x128xf32> -> vector<8x128xf32>
    %6 = arith.addf %2, %5 : vector<8x128xf32>
    %c0_8 = arith.constant 0 : index
    %c0_9 = arith.constant 0 : index
    %7 = vector.load %arg5[%c0_8, %c0_9] : memref<1x128xf32, #tpu.memory_space<vmem>>, vector<1x128xf32>
    %8 = vector.broadcast %7 : vector<1x128xf32> to vector<8x128xf32>
    %9 = arith.addf %6, %8 : vector<8x128xf32>
    %cst_10 = arith.constant 0.000000e+00 : f32
    %10 = vector.broadcast %cst_10 : f32 to vector<8x128xf32>
    %11 = arith.maximumf %9, %10 : vector<8x128xf32>
    %c0_11 = arith.constant 0 : index
    %c0_12 = arith.constant 0 : index
    %12 = vector.load %arg6[%c0_11, %c0_12] : memref<128x128xf32, #tpu.memory_space<vmem>>, vector<128x128xf32>
    %cst_13 = arith.constant dense<0.000000e+00> : vector<8x128xf32>
    %13 = tpu.matmul %11, %12, %cst_13 {dimension_numbers = #tpu.dot_dimension_numbers<[1], [0], [0], [1], [0, 0, 1, 1], [], []>} : vector<8x128xf32>, vector<128x128xf32>, vector<8x128xf32> -> vector<8x128xf32>
    %c0_14 = arith.constant 0 : index
    %c0_15 = arith.constant 0 : index
    %14 = vector.load %arg7[%c0_14, %c0_15] : memref<1x128xf32, #tpu.memory_space<vmem>>, vector<1x128xf32>
    %15 = vector.broadcast %14 : vector<1x128xf32> to vector<8x128xf32>
    %16 = arith.addf %13, %15 : vector<8x128xf32>
    %cst_16 = arith.constant 0.000000e+00 : f32
    %17 = vector.broadcast %cst_16 : f32 to vector<8x128xf32>
    %18 = arith.maximumf %16, %17 : vector<8x128xf32>
    %c0_17 = arith.constant 0 : index
    %c0_18 = arith.constant 0 : index
    %19 = vector.load %arg8[%c0_17, %c0_18] : memref<128x1xf32, #tpu.memory_space<vmem>>, vector<128x1xf32>
    %cst_19 = arith.constant dense<0.000000e+00> : vector<8x1xf32>
    %20 = tpu.matmul %18, %19, %cst_19 {dimension_numbers = #tpu.dot_dimension_numbers<[1], [0], [0], [1], [0, 0, 1, 1], [], []>} : vector<8x128xf32>, vector<128x1xf32>, vector<8x1xf32> -> vector<8x1xf32>
    %c0_20 = arith.constant 0 : index
    %c0_21 = arith.constant 0 : index
    %21 = vector.load %arg9[%c0_20, %c0_21] : memref<1x1xf32, #tpu.memory_space<vmem>>, vector<1x1xf32>
    %22 = vector.broadcast %21 : vector<1x1xf32> to vector<8x1xf32>
    %23 = arith.addf %20, %22 : vector<8x1xf32>
    %c0_22 = arith.constant 0 : index
    %c0_23 = arith.constant 0 : index
    %24 = vector.load %arg10[%c0_22, %c0_23] : memref<8x1xf32, #tpu.memory_space<vmem>>, vector<8x1xf32>
    tpu.vector_store %arg10[%c0_22, %c0_23], %23 {strides = array<i32>} : memref<8x1xf32, #tpu.memory_space<vmem>>, vector<8x1xf32>,
    return
  }
  func.func @transform_0(%arg0: i32) -> (i32, i32) {
    %c0_i32 = arith.constant 0 : i32
    %c0_i32_0 = arith.constant 0 : i32
    return %arg0, %c0_i32 : i32, i32
  }
  func.func @transform_1(%arg0: i32) -> (i32, i32) {
    %c0_i32 = arith.constant 0 : i32
    %c0_i32_0 = arith.constant 0 : i32
    return %arg0, %c0_i32 : i32, i32
  }
  func.func @transform_2(%arg0: i32) -> (i32, i32) {
    %c0_i32 = arith.constant 0 : i32
    %c0_i32_0 = arith.constant 0 : i32
    %c0_i32_1 = arith.constant 0 : i32
    return %c0_i32, %c0_i32_0 : i32, i32
  }
  func.func @transform_3(%arg0: i32) -> (i32, i32) {
    %c0_i32 = arith.constant 0 : i32
    %c0_i32_0 = arith.constant 0 : i32
    %c0_i32_1 = arith.constant 0 : i32
    return %c0_i32, %c0_i32_0 : i32, i32
  }
  func.func @transform_4(%arg0: i32) -> (i32, i32) {
    %c0_i32 = arith.constant 0 : i32
    %c0_i32_0 = arith.constant 0 : i32
    %c0_i32_1 = arith.constant 0 : i32
    return %c0_i32, %c0_i32_0 : i32, i32
  }
  func.func @transform_5(%arg0: i32) -> (i32, i32) {
    %c0_i32 = arith.constant 0 : i32
    %c0_i32_0 = arith.constant 0 : i32
    %c0_i32_1 = arith.constant 0 : i32
    return %c0_i32, %c0_i32_0 : i32, i32
  }
  func.func @transform_6(%arg0: i32) -> (i32, i32) {
    %c0_i32 = arith.constant 0 : i32
    %c0_i32_0 = arith.constant 0 : i32
    %c0_i32_1 = arith.constant 0 : i32
    return %c0_i32, %c0_i32_0 : i32, i32
  }
  func.func @transform_7(%arg0: i32) -> (i32, i32) {
    %c0_i32 = arith.constant 0 : i32
    %c0_i32_0 = arith.constant 0 : i32
    %c0_i32_1 = arith.constant 0 : i32
    return %c0_i32, %c0_i32_0 : i32, i32
  }
  func.func @transform_8(%arg0: i32) -> (i32, i32) {
    %c0_i32 = arith.constant 0 : i32
    %c0_i32_0 = arith.constant 0 : i32
    %c0_i32_1 = arith.constant 0 : i32
    return %c0_i32, %c0_i32_0 : i32, i32
  }
  func.func @transform_9(%arg0: i32) -> (i32, i32) {
    %c0_i32 = arith.constant 0 : i32
    %c0_i32_0 = arith.constant 0 : i32
    return %arg0, %c0_i32 : i32, i32
  }
}

</mosaic_0001>

<bundles_post_ra>
// kernel: _qfunction_forward_impl.1
= control target key start
LH: loop header
LB: loop body
LE: loop exit
PB: predicated region body
PF: predicated region fallthrough
CT: control target
= control target key end

     0   :  { %vm43_vm0 = vcmask 1043456   ;;  %v574_v0 = vmov 0.0|0.0   ;;  %v575_v1 = vmov 0.0   ;;  %vm39_vm1 = vcmask 31744   ;;  %s771_s2 = inlined_call_operand.vmem [shape: f32[16,128], index: 2, kind: input, shape index: {}]   ;;  %s772_s3 = inlined_call_operand.vmem [shape: f32[4,128], index: 3, kind: input, shape index: {}]   ;;  %s773_s1 = inlined_call_operand.vmem [shape: f32[8,4], index: 1, kind: input, shape index: {}]   ;;  %s774_s5 = inlined_call_operand.vmem [shape: f32[128,128], index: 5, kind: input, shape index: {}]   ;;  %s775_s0 = inlined_call_operand.vmem [shape: f32[8,16], index: 0, kind: input, shape index: {}]   ;;  %s776_s7 = inlined_call_operand.vmem [shape: f32[128,1], index: 7, kind: input, shape index: {}]   ;;  %s777_s4 = inlined_call_operand.vmem [shape: f32[1,128], index: 4, kind: input, shape index: {}]   ;;  %s778_s8 = inlined_call_operand.<no memory space> [shape: f32[1,1], index: 8, kind: input, shape index: {}]   ;;  %s779_s6 = inlined_call_operand.vmem [shape: f32[1,128], index: 6, kind: input, shape index: {}]   ;;  %s780_s9 = inlined_call_operand.vmem [shape: f32[8,1], index: 9, kind: output, shape index: {}]  }
   0x1   :  { %520 = vmatprep.subr.bf16.mxu1 %v574_v0  ;;  %438 = vmatprep.subr.mxu0 %v575_v1  ;;  %v35_v2 = vld [vmem:[%s771_s2] sm:$0xff]  ;;  %v36_v3 = vld [vmem:[%s771_s2 + $0x8] sm:$0xff]  ;;  %vm576_vm2 = vmmov 0   ;;  %v202_v9 = vld [vmem:[%s774_s5 + $0x10] sm:$0xff]  ;;  %vm117_vm3 = vcmask 130048   ;;  %vm387_vm4 = vcmask 7168  }
   0x2   :  { %v38_v4 = vld [vmem:[%s772_s3] sm:$0xf]  ;;  %v521_v5 = vpack.c.bf16 %v36_v3, %v35_v2  ;;  %440 = vmatprep.mubr.msk.f32.mxu0 %vm576_vm2, %v575_v1  ;;  %447 = vmatprep.mubr.msk.f32.mxu1 %vm576_vm2, %v575_v1  ;;  %v201_v8 = vld [vmem:[%s774_s5 + $0x8] sm:$0xff]  ;;  %v203_v10 = vld [vmem:[%s774_s5 + $0x18] sm:$0xff] }
   0x3   :  { %439 = vmatpush3.msk.msra.mxu0 %vm43_vm0, %v38_v4  ;;  %v37_v6 = vld [vmem:[%s773_s1] sm:$0xff]  ;;  %v527_v13 = vpack.c.bf16 %v203_v10, %v202_v9  ;;  %v205_v15 = vld [vmem:[%s774_s5 + $0x28] sm:$0xff]  ;;  %v206_v17 = vld [vmem:[%s774_s5 + $0x30] sm:$0xff] }
   0x4   :  { %v200_v7 = vld [vmem:[%s774_s5] sm:$0xff]  ;;  %441 = vmatmul.mubr.msk.f32.vlgmr.msra.gmra.mrb[0].mxu0 %vm39_vm1, %v37_v6  ;;  %522 = vmatpush3.bf16.msra.mxu1 %v521_v5  ;;  %v207_v18 = vld [vmem:[%s774_s5 + $0x38] sm:$0xff]  ;;  %v209_v21 = vld [vmem:[%s774_s5 + $0x48] sm:$0xff] }
   0x5   :  { %v34_v11 = vld [vmem:[%s775_s0] sm:$0xff]  ;;  %523 = vmatprep.subr.bf16.mxu0 %v574_v0  ;;  %v524_v12 = vpack.c.bf16 %v201_v8, %v200_v7  ;;  %482 = vmatprep.mubr.msk.f32.mxu0 %vm576_vm2, %v575_v1  ;;  %v533_v19 = vpack.c.bf16 %v207_v18, %v206_v17  ;;  %v210_v23 = vld [vmem:[%s774_s5 + $0x50] sm:$0xff]  ;;  %v211_v24 = vld [vmem:[%s774_s5 + $0x58] sm:$0xff] }
   0x6   :  { %547 = vmatprep.subr.bf16.mxu1 %v574_v0  ;;  %v204_v14 = vld [vmem:[%s774_s5 + $0x20] sm:$0xff]  ;;  %v539_v25 = vpack.c.bf16 %v211_v24, %v210_v23  ;;  %v213_v27 = vld [vmem:[%s774_s5 + $0x68] sm:$0xff]  ;;  %v214_v29 = vld [vmem:[%s774_s5 + $0x70] sm:$0xff] }
   0x7   :  { %525 = vmatpush3.bf16.msra.mxu0 %v524_v12  ;;  %448 = vmatmul.mubr.msk.f32.vlgmr.msra.gmra.mrb[0].mxu1 %vm117_vm3, %v34_v11  ;;  %v530_v16 = vpack.c.bf16 %v205_v15, %v204_v14  ;;  %v208_v20 = vld [vmem:[%s774_s5 + $0x40] sm:$0xff]  ;;  %v215_v30 = vld [vmem:[%s774_s5 + $0x78] sm:$0xff]  ;;  %v295_v33 = vld [vmem:[%s776_s7 + $0x8] sm:$0xff] }
   0x8   :  { %526 = vmatprep.subr.bf16.mxu0 %v574_v0  ;;  %517 = vmatprep.mubr.msk.f32.mxu1 %vm576_vm2, %v575_v1  ;;  %v536_v22 = vpack.c.bf16 %v209_v21, %v208_v20  ;;  %v212_v26 = vld [vmem:[%s774_s5 + $0x60] sm:$0xff]  ;;  %v545_v31 = vpack.c.bf16 %v215_v30, %v214_v29  ;;  %v296_v34 = vld [vmem:[%s776_s7 + $0x10] sm:$0xff]  ;;  %v297_v36 = vld [vmem:[%s776_s7 + $0x18] sm:$0xff] }
   0x9   :  { %v542_v28 = vpack.c.bf16 %v213_v27, %v212_v26  ;;  %v294_v32 = vld [vmem:[%s776_s7] sm:$0xff]  ;;  %v551_v37 = vpack.c.bf16 %v297_v36, %v296_v34  ;;  %v299_v39 = vld [vmem:[%s776_s7 + $0x28] sm:$0xff]  ;;  %v300_v41 = vld [vmem:[%s776_s7 + $0x30] sm:$0xff] }
   0xa   :  { %v548_v35 = vpack.c.bf16 %v295_v33, %v294_v32  ;;  %v298_v38 = vld [vmem:[%s776_s7 + $0x20] sm:$0xff]  ;;  %v301_v42 = vld [vmem:[%s776_s7 + $0x38] sm:$0xff]  ;;  %v303_v45 = vld [vmem:[%s776_s7 + $0x48] sm:$0xff] }
   0xb   :  { %528 = vmatpush3.bf16.msra.mxu0 %v527_v13  ;;  %v554_v40 = vpack.c.bf16 %v299_v39, %v298_v38  ;;  %v557_v43 = vpack.c.bf16 %v301_v42, %v300_v41  ;;  %v302_v44 = vld [vmem:[%s776_s7 + $0x40] sm:$0xff]  ;;  %v304_v47 = vld [vmem:[%s776_s7 + $0x50] sm:$0xff]  ;;  %v305_v48 = vld [vmem:[%s776_s7 + $0x58] sm:$0xff] }
   0xc   :  { %529 = vmatprep.subr.bf16.mxu0 %v574_v0  ;;  %549 = vmatpush3.bf16.msra.mxu1 %v548_v35  ;;  %v560_v46 = vpack.c.bf16 %v303_v45, %v302_v44  ;;  %v563_v49 = vpack.c.bf16 %v305_v48, %v304_v47  ;;  %v306_v50 = vld [vmem:[%s776_s7 + $0x60] sm:$0xff]  ;;  %v307_v51 = vld [vmem:[%s776_s7 + $0x68] sm:$0xff]  ;;  %v308_v61 = vld [vmem:[%s776_s7 + $0x70] sm:$0xff] }
   0xd   :  { %550 = vmatprep.subr.bf16.mxu1 %v574_v0  ;;  %v566_v52 = vpack.c.bf16 %v307_v51, %v306_v50  ;;  %v396_v56 = vld [vmem:[%s777_s4] ss:$0 sm:$0xff]  ;;  %v309_v62 = vld [vmem:[%s776_s7 + $0x78] sm:$0xff] }
   0xe   :  { %v569_v63 = vpack.c.bf16 %v309_v62, %v308_v61  ;;  %v397_v1 = vld [vmem:[%s779_s6] ss:$0 sm:$0xff] }
   0xf   :  { %531 = vmatpush3.bf16.msra.mxu0 %v530_v16 }
  0x10   :  { %532 = vmatprep.subr.bf16.mxu0 %v574_v0  ;;  %552 = vmatpush3.bf16.msra.mxu1 %v551_v37 }
  0x11   :  { %553 = vmatprep.subr.bf16.mxu1 %v574_v0 }
  0x13   :  { %534 = vmatpush3.bf16.msra.mxu0 %v533_v19 }
  0x14   :  { %535 = vmatprep.subr.bf16.mxu0 %v574_v0  ;;  %555 = vmatpush3.bf16.msra.mxu1 %v554_v40 }
  0x15   :  { %556 = vmatprep.subr.bf16.mxu1 %v574_v0 }
  0x17   :  { %537 = vmatpush3.bf16.msra.mxu0 %v536_v22 }
  0x18   :  { %538 = vmatprep.subr.bf16.mxu0 %v574_v0  ;;  %558 = vmatpush3.bf16.msra.mxu1 %v557_v43 }
  0x19   :  { %559 = vmatprep.subr.bf16.mxu1 %v574_v0 }
  0x1b   :  { %540 = vmatpush3.bf16.msra.mxu0 %v539_v25 }
  0x1c   :  { %541 = vmatprep.subr.bf16.mxu0 %v574_v0  ;;  %561 = vmatpush3.bf16.msra.mxu1 %v560_v46 }
  0x1d   :  { %562 = vmatprep.subr.bf16.mxu1 %v574_v0 }
  0x1f   :  { %543 = vmatpush3.bf16.msra.mxu0 %v542_v28 }
  0x20   :  { %544 = vmatprep.subr.bf16.mxu0 %v574_v0  ;;  %564 = vmatpush3.bf16.msra.mxu1 %v563_v49 }
  0x21   :  { %565 = vmatprep.subr.bf16.mxu1 %v574_v0 }
  0x23   :  { %546 = vmatpush3.bf16.msra.mxu0 %v545_v31 }
  0x24   :  { %567 = vmatpush3.bf16.msra.mxu1 %v566_v52 }
  0x25   :  { %568 = vmatprep.subr.bf16.mxu1 %v574_v0  ;;  %v14_v0 = vstv %s778_s8 }
  0x26   :  { %15 = vst [vmem:[#allocation2] sm:$0x1] %v14_v0 }
  0x28   :  { %570 = vmatpush3.bf16.msra.mxu1 %v569_v63 }
  0x2d   :  { %v398_v6 = vld [vmem:[#allocation2] ss:$0 sm:$0xff] }
  0xd7   :  { %v113_v53 = vpop.f32.mrb[0].mxu0 }
  0xd8   :  { %v442_v54 = vpop.f32.mrb[1].mxu0 }
  0xda   :  { %v187_v55 = vpop.f32.mrb[0].mxu1 }
  0xdb   :  { %v188_v57 = vadd.f32 %v187_v55, %v113_v53  ;;  %v449_v58 = vpop.f32.mrb[1].mxu1 }
  0xdd   :  { %v198_v59 = vadd.f32 %v396_v56, %v188_v57 }
  0xdf   :  { %v199_v60 = vmax.f32 %v198_v59, 0.0 }
  0xe1   :  { %483 = vmatmul.mubr.f32.vlgmr.msra.gmra.mrb[2].mxu0 %v199_v60 }
 0x1b4   :  { %v289_v2 = vpop.f32.mrb[2].mxu0 }
 0x1b5   :  { %v290_v3 = vadd.f32 %v397_v1, %v289_v2  ;;  %v484_v4 = vpop.f32.mrb[3].mxu0 }
 0x1b7   :  { %v293_v5 = vmax.f32 %v290_v3, 0.0 }
 0x1b9   :  { %518 = vmatmul.mubr.f32.vlgmr.msra.gmra.mrb[2].mxu1 %v293_v5 }
 0x28c   :  { %v383_v7 = vpop.f32.mrb[2].mxu1 }
 0x28d   :  { %v384_v8 = vadd.f32 %v398_v6, %v383_v7  ;;  %v519_v9 = vpop.f32.mrb[3].mxu1 }
 0x28f   :  { %388 = vst.msk [vmem:[%s780_s9] sm:$0xff] %vm387_vm4, %v384_v8 }

</bundles_post_ra>
